<compile_context>
chip_gen: v5e
topology: v5e:2x2
jax: 0.10.0
libtpu: 0.0.40
codegen_flags: <defaults>
</compile_context>

<pallas_src>
import functools

import jax
import jax.numpy as jnp
from jax import lax
from jax.experimental import pallas as pl
from jax.experimental.pallas import tpu as pltpu


# ----------------------------- Pallas kernel ------------------------------- #

def mbconv_kernel(x_ref, we_ref, be_ref, wf9_ref, wb_ref, cvec_ref, m_ref,
                  wr_ref, br_ref, o_ref, *, W):
    # x_ref/o_ref: (C, L) lane-dense block (L = batch_tile * H * W).
    # we_ref: (I, C) bf16      be_ref:  (I, 1) f32  (expand bias = pad value)
    # wf9_ref: (9, I, I) bf16  attn-folded 3x3 weights, eye folded into tap 4
    # wb_ref: (I, 9) f32       wb[:, t] = wf_t @ b_exp  (border-ring weights)
    # cvec_ref: (I, 1) f32     attn*b_fea + sum_t wb[:, t]
    # m_ref: (9, L) f32        per-tap in-image validity masks (0/1)
    # wr_ref: (C, I) bf16      br_ref:  (C, 1) f32
    mm = we_ref.dtype                                   # bf16 MXU operand dtype
    L = x_ref.shape[1]

    x = x_ref[...]                                      # (C, L) f32
    masks = m_ref[...]                                  # (9, L) f32 in {0, 1}

    # expand_conv: 1x1 conv == channel matmul (f32 accumulation).
    out_id = jnp.dot(we_ref[...], x.astype(mm),
                     preferred_element_type=jnp.float32) + be_ref[...]   # (I, L)

    # fea_conv (3x3, attn folded into wf9, identity folded into tap 4).
    # Accumulator starts with bias + border-ring correction:
    #   attn*b_fea + sum_t (wf_t @ b_exp) * (1 - valid_t) == cvec - Wb @ valid
    # which rides the MXU as a K=9 matmul on the already-loaded masks.
    acc = cvec_ref[...] - jnp.dot(wb_ref[...], masks,
                                  preferred_element_type=jnp.float32)    # (I, L)

    for t in range(9):                                  # t = (dy+1)*3 + (dx+1)
        dy = t // 3 - 1
        dx = t % 3 - 1
        s = dy * W + dx                                 # flat lane shift
        # shifted[p] == out_id[p + s]; wrap / cross-image reads are masked out.
        shifted = out_id if s == 0 else pltpu.roll(out_id, (-s) % L, axis=1)
        if t == 4:
            tap = shifted                               # centre tap: always valid
        else:
            tap = shifted * masks[t:t + 1, :]           # zero out-of-image lanes
        acc = acc + jnp.dot(wf9_ref[t], tap.astype(mm),
                            preferred_element_type=jnp.float32)

    # reduce_conv (1x1) + residual.
    red = jnp.dot(wr_ref[...], acc.astype(mm),
                  preferred_element_type=jnp.float32) + br_ref[...]      # (C, L)
    o_ref[...] = (red + x).astype(o_ref.dtype)


# ------------------------------- Wrapper ----------------------------------- #

def compute_attn(params):
    # ASR.se applied to ASR.tensor (parameter-only, input-independent).
    t = params["asr_tensor"]                            # (I,)
    z = t @ params["w_se1"].T                           # Linear(I -> I//4)
    z = z * jax.nn.sigmoid(z)                           # SiLU
    z = z @ params["w_se2"].T                           # Linear(I//4 -> I)
    return jax.nn.sigmoid(z)                            # (I,)


@functools.partial(jax.jit, static_argnames=("batch_tile",))
def mbconv_forward(x_nchw, params, batch_tile=None):
    N, C, H, W = x_nchw.shape
    HW = H * W
    I = params["k_exp"].shape[0]
    mm = jnp.bfloat16                                   # MXU operand dtype

    # Batch tiling: fold batch_tile images onto the lane axis per grid step so
    # each step has >= ~512 lanes (amortises per-step overhead, keeps stores
    # full unmasked vst).  Remaining grid steps are independent ("parallel").
    if batch_tile is None:
        batch_tile = max(1, min(N, max(1, 512 // HW)))
        while N % batch_tile:
            batch_tile -= 1
    LB = batch_tile * HW
    assert LB % 128 == 0 or batch_tile == N, \
        "per-step lane extent must be a multiple of 128 (pad W in the wrapper)"
    # TODO(synk): for production super-res sizes (single image >> VMEM) add a
    # row-strip grid axis with a 1-row halo and global-row masks; size strips
    # so live temporaries stay under ~40 MiB for v7x's 64 MiB VMEM (v5e/v6e
    # can take ~2x larger strips with vmem_limit_bytes ~96 MiB).

    # --- parameter preprocessing (all f32, batch-invariant) ----------------- #
    b_exp = params["b_exp"].astype(jnp.float32)
    we = params["k_exp"][:, :, 0, 0].astype(mm)                          # (I, C)
    be = b_exp.reshape(I, 1)                                             # (I, 1)
    attn = compute_attn(params).astype(jnp.float32)                      # (I,)
    # attn-folded 3x3 weights as nine (I_out, I_in) tap slabs, t = kh*3 + kw.
    wf9 = (jnp.transpose(params["k_fea"].astype(jnp.float32), (2, 3, 0, 1))
           .reshape(9, I, I) * attn[None, :, None])                      # (9, I, I)
    bfa = params["b_fea"].astype(jnp.float32) * attn                     # (I,)
    # Border-ring correction pieces:  attn*fea(pad ring) == cvec - Wb @ valid.
    wb = jnp.einsum("toc,c->ot", wf9, b_exp)                             # (I, 9)
    cvec = (bfa + jnp.sum(wb, axis=1)).reshape(I, 1)                     # (I, 1)
    # Fold the "+ out_identity" branch into the centre tap (always valid).
    wf9 = wf9.at[4].add(jnp.eye(I, dtype=jnp.float32)).astype(mm)        # (9, I, I)
    wr = params["k_red"][:, :, 0, 0].astype(mm)                          # (C, I)
    br = params["b_red"].reshape(C, 1).astype(jnp.float32)               # (C, 1)

    # Per-tap in-image validity masks over the batch-folded lane axis
    # (per-image coordinates, so cross-image roll wrap is always masked).
    p = jnp.arange(LB, dtype=jnp.int32) % HW
    yy, xx = p // W, p % W
    masks = jnp.stack(
        [((yy + dy >= 0) & (yy + dy < H) & (xx + dx >= 0) & (xx + dx < W))
         for dy in (-1, 0, 1) for dx in (-1, 0, 1)],
        axis=0).astype(jnp.float32)                                      # (9, LB)

    # (N, C, H, W) -> (C, N*HW): channels on sublanes, images on lanes.
    x_lanes = jnp.transpose(x_nchw.reshape(N, C, HW), (1, 0, 2)).reshape(C, N * HW)

    def rep_spec(a):
        return pl.BlockSpec(a.shape, lambda n, _nd=a.ndim: (0,) * _nd)

    kernel = functools.partial(mbconv_kernel, W=W)

    out = pl.pallas_call(
        kernel,
        out_shape=jax.ShapeDtypeStruct((C, N * HW), x_nchw.dtype),
        grid_spec=pltpu.PrefetchScalarGridSpec(
            num_scalar_prefetch=0,
            grid=(N // batch_tile,),
            in_specs=[
                pl.BlockSpec((C, LB), lambda n: (0, n)),                 # x
                rep_spec(we), rep_spec(be), rep_spec(wf9), rep_spec(wb),
                rep_spec(cvec), rep_spec(masks), rep_spec(wr), rep_spec(br),
            ],
            out_specs=pl.BlockSpec((C, LB), lambda n: (0, n)),
        ),
        compiler_params=pltpu.CompilerParams(
            dimension_semantics=("parallel",),
            # v7x-safe (64 MiB physical VMEM); raise towards ~96 MiB on
            # v5e/v6e when using larger strips / batch tiles.
            vmem_limit_bytes=48 * 1024 * 1024,
        ),
    )(x_lanes, we, be, wf9, wb, cvec, masks, wr, br)
    return jnp.transpose(out.reshape(C, N, HW), (1, 0, 2)).reshape(N, C, H, W)


# ------------------------- Deterministic params ---------------------------- #

def init_params(key, n_feat, ratio=2, dtype=jnp.float32):
    i_feat = n_feat * ratio
    ks = jax.random.split(key, 6)

    def uni(k, shape, fan_in):
        bound = 1.0 / (fan_in ** 0.5)
        return jax.random.uniform(k, shape, dtype, -bound, bound)

    return {
        # PyTorch-layout conv params (O, I, kh, kw)
        "k_exp": uni(ks[0], (i_feat, n_feat, 1, 1), n_feat),
        "b_exp": uni(ks[1], (i_feat,), n_feat),
        "k_fea": uni(ks[2], (i_feat, i_feat, 3, 3), i_feat * 9),
        "b_fea": uni(ks[3], (i_feat,), i_feat * 9),
        "k_red": uni(ks[4], (n_feat, i_feat, 1, 1), i_feat),
        "b_red": uni(ks[5], (n_feat,), i_feat),
        # ASR params: init_weights fills SE linears with 1, tensor = 0.1
        "asr_tensor": 0.1 * jnp.ones((i_feat,), dtype),
        "w_se1": jnp.ones((i_feat // 4, i_feat), dtype),
        "w_se2": jnp.ones((i_feat, i_feat // 4), dtype),
    }


# -------------------- Plain-JAX NCHW reference (PyTorch semantics) --------- #

def mbconv_ref_nchw(x_nchw, params):
    dn = ("NCHW", "OIHW", "NCHW")

    def conv(x, w, b):
        y = lax.conv_general_dilated(x, w, (1, 1), "VALID", dimension_numbers=dn)
        return y + b.reshape(1, -1, 1, 1)

    out = conv(x_nchw, params["k_exp"], params["b_exp"])
    out_identity = out
    pat = params["b_exp"].reshape(1, -1, 1, 1)
    padded = jnp.pad(out, ((0, 0), (0, 0), (1, 1), (1, 1)))
    padded = padded.at[:, :, 0:1, :].set(pat)
    padded = padded.at[:, :, -1:, :].set(pat)
    padded = padded.at[:, :, :, 0:1].set(pat)
    padded = padded.at[:, :, :, -1:].set(pat)
    out = conv(padded, params["k_fea"], params["b_fea"])
    attn = compute_attn(params).reshape(1, -1, 1, 1)
    out = attn * out + out_identity
    out = conv(out, params["k_red"], params["b_red"])
    return out + x_nchw


# --------------------------------- Main ------------------------------------ #

if __name__ == "__main__":
    n_feat, ratio = 4, 2
    N, H, W = 2, 16, 16

    key = jax.random.PRNGKey(0)
    kx, kp = jax.random.split(key)
    params = init_params(kp, n_feat, ratio)

    x_nchw = jax.random.normal(kx, (N, n_feat, H, W), jnp.float32)

    out_nchw = mbconv_forward(x_nchw, params)
    out_nchw = jax.block_until_ready(out_nchw)

    ref_nchw = mbconv_ref_nchw(x_nchw, params)
    assert out_nchw.shape == ref_nchw.shape
    # Tolerance sized for bf16 MXU operands with f32 accumulation (reference is
    # pure f32); border-ring / bias / residual paths stay f32 in the kernel.
    assert jnp.allclose(out_nchw, ref_nchw, atol=5e-2, rtol=1e-2), (
        "Pallas MBConv output mismatch vs reference")

    print("KERNEL_OK")
</pallas_src>

<mosaic_0001>
module attributes {stable_mosaic.version = 11 : i64} {
  func.func @mbconv_kernel(%arg0: i32, %arg1: memref<4x512xf32, #tpu.memory_space<vmem>>, %arg2: memref<8x4xbf16, #tpu.memory_space<vmem>>, %arg3: memref<8x1xf32, #tpu.memory_space<vmem>>, %arg4: memref<9x8x8xbf16, #tpu.memory_space<vmem>>, %arg5: memref<8x9xf32, #tpu.memory_space<vmem>>, %arg6: memref<8x1xf32, #tpu.memory_space<vmem>>, %arg7: memref<9x512xf32, #tpu.memory_space<vmem>>, %arg8: memref<4x8xbf16, #tpu.memory_space<vmem>>, %arg9: memref<4x1xf32, #tpu.memory_space<vmem>>, %arg10: memref<4x512xf32, #tpu.memory_space<vmem>>) attributes {dimension_semantics = [#tpu.dimension_semantics<parallel>], iteration_bounds = array<i64: 1>, scalar_prefetch = 0 : i64, scratch_operands = 0 : i64, tpu.core_type = #tpu.core_type<tc>, window_params = [{transform_indices = @transform_0, window_bounds = array<i64: 4, 512>}, {pipeline_mode = #tpu.pipeline_mode<synchronous>, transform_indices = @transform_1, window_bounds = array<i64: 8, 4>}, {pipeline_mode = #tpu.pipeline_mode<synchronous>, transform_indices = @transform_2, window_bounds = array<i64: 8, 1>}, {pipeline_mode = #tpu.pipeline_mode<synchronous>, transform_indices = @transform_3, window_bounds = array<i64: 9, 8, 8>}, {pipeline_mode = #tpu.pipeline_mode<synchronous>, transform_indices = @transform_4, window_bounds = array<i64: 8, 9>}, {pipeline_mode = #tpu.pipeline_mode<synchronous>, transform_indices = @transform_5, window_bounds = array<i64: 8, 1>}, {pipeline_mode = #tpu.pipeline_mode<synchronous>, transform_indices = @transform_6, window_bounds = array<i64: 9, 512>}, {pipeline_mode = #tpu.pipeline_mode<synchronous>, transform_indices = @transform_7, window_bounds = array<i64: 4, 8>}, {pipeline_mode = #tpu.pipeline_mode<synchronous>, transform_indices = @transform_8, window_bounds = array<i64: 4, 1>}, {transform_indices = @transform_9, window_bounds = array<i64: 4, 512>}]} {
    %c0 = arith.constant 0 : index
    %c0_0 = arith.constant 0 : index
    %0 = vector.load %arg1[%c0, %c0_0] : memref<4x512xf32, #tpu.memory_space<vmem>>, vector<4x512xf32>
    %c0_1 = arith.constant 0 : index
    %c0_2 = arith.constant 0 : index
    %1 = vector.load %arg7[%c0_1, %c0_2] : memref<9x512xf32, #tpu.memory_space<vmem>>, vector<9x512xf32>
    %c0_3 = arith.constant 0 : index
    %c0_4 = arith.constant 0 : index
    %2 = vector.load %arg2[%c0_3, %c0_4] : memref<8x4xbf16, #tpu.memory_space<vmem>>, vector<8x4xbf16>
    %3 = arith.truncf %0 : vector<4x512xf32> to vector<4x512xbf16>
    %cst = arith.constant dense<0.000000e+00> : vector<8x512xf32>
    %4 = tpu.matmul %2, %3, %cst {dimension_numbers = #tpu.dot_dimension_numbers<[1], [0], [0], [1], [0, 0, 1, 1], [], []>} : vector<8x4xbf16>, vector<4x512xbf16>, vector<8x512xf32> -> vector<8x512xf32>
    %c0_5 = arith.constant 0 : index
    %c0_6 = arith.constant 0 : index
    %5 = vector.load %arg3[%c0_5, %c0_6] : memref<8x1xf32, #tpu.memory_space<vmem>>, vector<8x1xf32>
    %6 = vector.broadcast %5 : vector<8x1xf32> to vector<8x512xf32>
    %7 = arith.addf %4, %6 : vector<8x512xf32>
    %c0_7 = arith.constant 0 : index
    %c0_8 = arith.constant 0 : index
    %8 = vector.load %arg6[%c0_7, %c0_8] : memref<8x1xf32, #tpu.memory_space<vmem>>, vector<8x1xf32>
    %c0_9 = arith.constant 0 : index
    %c0_10 = arith.constant 0 : index
    %9 = vector.load %arg5[%c0_9, %c0_10] : memref<8x9xf32, #tpu.memory_space<vmem>>, vector<8x9xf32>
    %cst_11 = arith.constant dense<0.000000e+00> : vector<8x512xf32>
    %10 = tpu.matmul %9, %1, %cst_11 {dimension_numbers = #tpu.dot_dimension_numbers<[1], [0], [0], [1], [0, 0, 1, 1], [], []>} : vector<8x9xf32>, vector<9x512xf32>, vector<8x512xf32> -> vector<8x512xf32>
    %11 = vector.broadcast %8 : vector<8x1xf32> to vector<8x512xf32>
    %12 = arith.subf %11, %10 : vector<8x512xf32>
    %c17_i32 = arith.constant 17 : i32
    %13 = tpu.dynamic_rotate %7 by %c17_i32 dim 1 : vector<8x512xf32>, i32 -> vector<8x512xf32>
    %14 = vector.extract_strided_slice %1 {offsets = [0, 0], sizes = [1, 512], strides = [1, 1]} : vector<9x512xf32> to vector<1x512xf32>
    %15 = vector.broadcast %14 : vector<1x512xf32> to vector<8x512xf32>
    %16 = arith.mulf %13, %15 : vector<8x512xf32>
    %c0_12 = arith.constant 0 : index
    %c0_13 = arith.constant 0 : index
    %c0_14 = arith.constant 0 : index
    %17 = vector.load %arg4[%c0_12, %c0_13, %c0_14] : memref<9x8x8xbf16, #tpu.memory_space<vmem>>, vector<1x8x8xbf16>
    %18 = vector.shape_cast %17 : vector<1x8x8xbf16> to vector<8x8xbf16>
    %19 = arith.truncf %16 : vector<8x512xf32> to vector<8x512xbf16>
    %cst_15 = arith.constant dense<0.000000e+00> : vector<8x512xf32>
    %20 = tpu.matmul %18, %19, %cst_15 {dimension_numbers = #tpu.dot_dimension_numbers<[1], [0], [0], [1], [0, 0, 1, 1], [], []>} : vector<8x8xbf16>, vector<8x512xbf16>, vector<8x512xf32> -> vector<8x512xf32>
    %21 = arith.addf %12, %20 : vector<8x512xf32>
    %c16_i32 = arith.constant 16 : i32
    %22 = tpu.dynamic_rotate %7 by %c16_i32 dim 1 : vector<8x512xf32>, i32 -> vector<8x512xf32>
    %23 = vector.extract_strided_slice %1 {offsets = [1, 0], sizes = [1, 512], strides = [1, 1]} : vector<9x512xf32> to vector<1x512xf32>
    %24 = vector.broadcast %23 : vector<1x512xf32> to vector<8x512xf32>
    %25 = arith.mulf %22, %24 : vector<8x512xf32>
    %c1 = arith.constant 1 : index
    %c0_16 = arith.constant 0 : index
    %c0_17 = arith.constant 0 : index
    %26 = vector.load %arg4[%c1, %c0_16, %c0_17] : memref<9x8x8xbf16, #tpu.memory_space<vmem>>, vector<1x8x8xbf16>
    %27 = vector.shape_cast %26 : vector<1x8x8xbf16> to vector<8x8xbf16>
    %28 = arith.truncf %25 : vector<8x512xf32> to vector<8x512xbf16>
    %cst_18 = arith.constant dense<0.000000e+00> : vector<8x512xf32>
    %29 = tpu.matmul %27, %28, %cst_18 {dimension_numbers = #tpu.dot_dimension_numbers<[1], [0], [0], [1], [0, 0, 1, 1], [], []>} : vector<8x8xbf16>, vector<8x512xbf16>, vector<8x512xf32> -> vector<8x512xf32>
    %30 = arith.addf %21, %29 : vector<8x512xf32>
    %c15_i32 = arith.constant 15 : i32
    %31 = tpu.dynamic_rotate %7 by %c15_i32 dim 1 : vector<8x512xf32>, i32 -> vector<8x512xf32>
    %32 = vector.extract_strided_slice %1 {offsets = [2, 0], sizes = [1, 512], strides = [1, 1]} : vector<9x512xf32> to vector<1x512xf32>
    %33 = vector.broadcast %32 : vector<1x512xf32> to vector<8x512xf32>
    %34 = arith.mulf %31, %33 : vector<8x512xf32>
    %c2 = arith.constant 2 : index
    %c0_19 = arith.constant 0 : index
    %c0_20 = arith.constant 0 : index
    %35 = vector.load %arg4[%c2, %c0_19, %c0_20] : memref<9x8x8xbf16, #tpu.memory_space<vmem>>, vector<1x8x8xbf16>
    %36 = vector.shape_cast %35 : vector<1x8x8xbf16> to vector<8x8xbf16>
    %37 = arith.truncf %34 : vector<8x512xf32> to vector<8x512xbf16>
    %cst_21 = arith.constant dense<0.000000e+00> : vector<8x512xf32>
    %38 = tpu.matmul %36, %37, %cst_21 {dimension_numbers = #tpu.dot_dimension_numbers<[1], [0], [0], [1], [0, 0, 1, 1], [], []>} : vector<8x8xbf16>, vector<8x512xbf16>, vector<8x512xf32> -> vector<8x512xf32>
    %39 = arith.addf %30, %38 : vector<8x512xf32>
    %c1_i32 = arith.constant 1 : i32
    %40 = tpu.dynamic_rotate %7 by %c1_i32 dim 1 : vector<8x512xf32>, i32 -> vector<8x512xf32>
    %41 = vector.extract_strided_slice %1 {offsets = [3, 0], sizes = [1, 512], strides = [1, 1]} : vector<9x512xf32> to vector<1x512xf32>
    %42 = vector.broadcast %41 : vector<1x512xf32> to vector<8x512xf32>
    %43 = arith.mulf %40, %42 : vector<8x512xf32>
    %c3 = arith.constant 3 : index
    %c0_22 = arith.constant 0 : index
    %c0_23 = arith.constant 0 : index
    %44 = vector.load %arg4[%c3, %c0_22, %c0_23] : memref<9x8x8xbf16, #tpu.memory_space<vmem>>, vector<1x8x8xbf16>
    %45 = vector.shape_cast %44 : vector<1x8x8xbf16> to vector<8x8xbf16>
    %46 = arith.truncf %43 : vector<8x512xf32> to vector<8x512xbf16>
    %cst_24 = arith.constant dense<0.000000e+00> : vector<8x512xf32>
    %47 = tpu.matmul %45, %46, %cst_24 {dimension_numbers = #tpu.dot_dimension_numbers<[1], [0], [0], [1], [0, 0, 1, 1], [], []>} : vector<8x8xbf16>, vector<8x512xbf16>, vector<8x512xf32> -> vector<8x512xf32>
    %48 = arith.addf %39, %47 : vector<8x512xf32>
    %c4 = arith.constant 4 : index
    %c0_25 = arith.constant 0 : index
    %c0_26 = arith.constant 0 : index
    %49 = vector.load %arg4[%c4, %c0_25, %c0_26] : memref<9x8x8xbf16, #tpu.memory_space<vmem>>, vector<1x8x8xbf16>
    %50 = vector.shape_cast %49 : vector<1x8x8xbf16> to vector<8x8xbf16>
    %51 = arith.truncf %7 : vector<8x512xf32> to vector<8x512xbf16>
    %cst_27 = arith.constant dense<0.000000e+00> : vector<8x512xf32>
    %52 = tpu.matmul %50, %51, %cst_27 {dimension_numbers = #tpu.dot_dimension_numbers<[1], [0], [0], [1], [0, 0, 1, 1], [], []>} : vector<8x8xbf16>, vector<8x512xbf16>, vector<8x512xf32> -> vector<8x512xf32>
    %53 = arith.addf %48, %52 : vector<8x512xf32>
    %c511_i32 = arith.constant 511 : i32
    %54 = tpu.dynamic_rotate %7 by %c511_i32 dim 1 : vector<8x512xf32>, i32 -> vector<8x512xf32>
    %55 = vector.extract_strided_slice %1 {offsets = [5, 0], sizes = [1, 512], strides = [1, 1]} : vector<9x512xf32> to vector<1x512xf32>
    %56 = vector.broadcast %55 : vector<1x512xf32> to vector<8x512xf32>
    %57 = arith.mulf %54, %56 : vector<8x512xf32>
    %c5 = arith.constant 5 : index
    %c0_28 = arith.constant 0 : index
    %c0_29 = arith.constant 0 : index
    %58 = vector.load %arg4[%c5, %c0_28, %c0_29] : memref<9x8x8xbf16, #tpu.memory_space<vmem>>, vector<1x8x8xbf16>
    %59 = vector.shape_cast %58 : vector<1x8x8xbf16> to vector<8x8xbf16>
    %60 = arith.truncf %57 : vector<8x512xf32> to vector<8x512xbf16>
    %cst_30 = arith.constant dense<0.000000e+00> : vector<8x512xf32>
    %61 = tpu.matmul %59, %60, %cst_30 {dimension_numbers = #tpu.dot_dimension_numbers<[1], [0], [0], [1], [0, 0, 1, 1], [], []>} : vector<8x8xbf16>, vector<8x512xbf16>, vector<8x512xf32> -> vector<8x512xf32>
    %62 = arith.addf %53, %61 : vector<8x512xf32>
    %c497_i32 = arith.constant 497 : i32
    %63 = tpu.dynamic_rotate %7 by %c497_i32 dim 1 : vector<8x512xf32>, i32 -> vector<8x512xf32>
    %64 = vector.extract_strided_slice %1 {offsets = [6, 0], sizes = [1, 512], strides = [1, 1]} : vector<9x512xf32> to vector<1x512xf32>
    %65 = vector.broadcast %64 : vector<1x512xf32> to vector<8x512xf32>
    %66 = arith.mulf %63, %65 : vector<8x512xf32>
    %c6 = arith.constant 6 : index
    %c0_31 = arith.constant 0 : index
    %c0_32 = arith.constant 0 : index
    %67 = vector.load %arg4[%c6, %c0_31, %c0_32] : memref<9x8x8xbf16, #tpu.memory_space<vmem>>, vector<1x8x8xbf16>
    %68 = vector.shape_cast %67 : vector<1x8x8xbf16> to vector<8x8xbf16>
    %69 = arith.truncf %66 : vector<8x512xf32> to vector<8x512xbf16>
    %cst_33 = arith.constant dense<0.000000e+00> : vector<8x512xf32>
    %70 = tpu.matmul %68, %69, %cst_33 {dimension_numbers = #tpu.dot_dimension_numbers<[1], [0], [0], [1], [0, 0, 1, 1], [], []>} : vector<8x8xbf16>, vector<8x512xbf16>, vector<8x512xf32> -> vector<8x512xf32>
    %71 = arith.addf %62, %70 : vector<8x512xf32>
    %c496_i32 = arith.constant 496 : i32
    %72 = tpu.dynamic_rotate %7 by %c496_i32 dim 1 : vector<8x512xf32>, i32 -> vector<8x512xf32>
    %73 = vector.extract_strided_slice %1 {offsets = [7, 0], sizes = [1, 512], strides = [1, 1]} : vector<9x512xf32> to vector<1x512xf32>
    %74 = vector.broadcast %73 : vector<1x512xf32> to vector<8x512xf32>
    %75 = arith.mulf %72, %74 : vector<8x512xf32>
    %c7 = arith.constant 7 : index
    %c0_34 = arith.constant 0 : index
    %c0_35 = arith.constant 0 : index
    %76 = vector.load %arg4[%c7, %c0_34, %c0_35] : memref<9x8x8xbf16, #tpu.memory_space<vmem>>, vector<1x8x8xbf16>
    %77 = vector.shape_cast %76 : vector<1x8x8xbf16> to vector<8x8xbf16>
    %78 = arith.truncf %75 : vector<8x512xf32> to vector<8x512xbf16>
    %cst_36 = arith.constant dense<0.000000e+00> : vector<8x512xf32>
    %79 = tpu.matmul %77, %78, %cst_36 {dimension_numbers = #tpu.dot_dimension_numbers<[1], [0], [0], [1], [0, 0, 1, 1], [], []>} : vector<8x8xbf16>, vector<8x512xbf16>, vector<8x512xf32> -> vector<8x512xf32>
    %80 = arith.addf %71, %79 : vector<8x512xf32>
    %c495_i32 = arith.constant 495 : i32
    %81 = tpu.dynamic_rotate %7 by %c495_i32 dim 1 : vector<8x512xf32>, i32 -> vector<8x512xf32>
    %82 = vector.extract_strided_slice %1 {offsets = [8, 0], sizes = [1, 512], strides = [1, 1]} : vector<9x512xf32> to vector<1x512xf32>
    %83 = vector.broadcast %82 : vector<1x512xf32> to vector<8x512xf32>
    %84 = arith.mulf %81, %83 : vector<8x512xf32>
    %c8 = arith.constant 8 : index
    %c0_37 = arith.constant 0 : index
    %c0_38 = arith.constant 0 : index
    %85 = vector.load %arg4[%c8, %c0_37, %c0_38] : memref<9x8x8xbf16, #tpu.memory_space<vmem>>, vector<1x8x8xbf16>
    %86 = vector.shape_cast %85 : vector<1x8x8xbf16> to vector<8x8xbf16>
    %87 = arith.truncf %84 : vector<8x512xf32> to vector<8x512xbf16>
    %cst_39 = arith.constant dense<0.000000e+00> : vector<8x512xf32>
    %88 = tpu.matmul %86, %87, %cst_39 {dimension_numbers = #tpu.dot_dimension_numbers<[1], [0], [0], [1], [0, 0, 1, 1], [], []>} : vector<8x8xbf16>, vector<8x512xbf16>, vector<8x512xf32> -> vector<8x512xf32>
    %89 = arith.addf %80, %88 : vector<8x512xf32>
    %c0_40 = arith.constant 0 : index
    %c0_41 = arith.constant 0 : index
    %90 = vector.load %arg8[%c0_40, %c0_41] : memref<4x8xbf16, #tpu.memory_space<vmem>>, vector<4x8xbf16>
    %91 = arith.truncf %89 : vector<8x512xf32> to vector<8x512xbf16>
    %cst_42 = arith.constant dense<0.000000e+00> : vector<4x512xf32>
    %92 = tpu.matmul %90, %91, %cst_42 {dimension_numbers = #tpu.dot_dimension_numbers<[1], [0], [0], [1], [0, 0, 1, 1], [], []>} : vector<4x8xbf16>, vector<8x512xbf16>, vector<4x512xf32> -> vector<4x512xf32>
    %c0_43 = arith.constant 0 : index
    %c0_44 = arith.constant 0 : index
    %93 = vector.load %arg9[%c0_43, %c0_44] : memref<4x1xf32, #tpu.memory_space<vmem>>, vector<4x1xf32>
    %94 = vector.broadcast %93 : vector<4x1xf32> to vector<4x512xf32>
    %95 = arith.addf %92, %94 : vector<4x512xf32>
    %96 = arith.addf %95, %0 : vector<4x512xf32>
    %c0_45 = arith.constant 0 : index
    %c0_46 = arith.constant 0 : index
    %97 = vector.load %arg10[%c0_45, %c0_46] : memref<4x512xf32, #tpu.memory_space<vmem>>, vector<4x512xf32>
    tpu.vector_store %arg10[%c0_45, %c0_46], %96 {strides = array<i32>} : memref<4x512xf32, #tpu.memory_space<vmem>>, vector<4x512xf32>,
    return
  }
  func.func @transform_0(%arg0: i32) -> (i32, i32) {
    %c0_i32 = arith.constant 0 : i32
    %c0_i32_0 = arith.constant 0 : i32
    return %c0_i32, %arg0 : i32, i32
  }
  func.func @transform_1(%arg0: i32) -> (i32, i32) {
    %c0_i32 = arith.constant 0 : i32
    %c0_i32_0 = arith.constant 0 : i32
    %c0_i32_1 = arith.constant 0 : i32
    return %c0_i32, %c0_i32_0 : i32, i32
  }
  func.func @transform_2(%arg0: i32) -> (i32, i32) {
    %c0_i32 = arith.constant 0 : i32
    %c0_i32_0 = arith.constant 0 : i32
    %c0_i32_1 = arith.constant 0 : i32
    return %c0_i32, %c0_i32_0 : i32, i32
  }
  func.func @transform_3(%arg0: i32) -> (i32, i32, i32) {
    %c0_i32 = arith.constant 0 : i32
    %c0_i32_0 = arith.constant 0 : i32
    %c0_i32_1 = arith.constant 0 : i32
    %c0_i32_2 = arith.constant 0 : i32
    return %c0_i32, %c0_i32_0, %c0_i32_1 : i32, i32, i32
  }
  func.func @transform_4(%arg0: i32) -> (i32, i32) {
    %c0_i32 = arith.constant 0 : i32
    %c0_i32_0 = arith.constant 0 : i32
    %c0_i32_1 = arith.constant 0 : i32
    return %c0_i32, %c0_i32_0 : i32, i32
  }
  func.func @transform_5(%arg0: i32) -> (i32, i32) {
    %c0_i32 = arith.constant 0 : i32
    %c0_i32_0 = arith.constant 0 : i32
    %c0_i32_1 = arith.constant 0 : i32
    return %c0_i32, %c0_i32_0 : i32, i32
  }
  func.func @transform_6(%arg0: i32) -> (i32, i32) {
    %c0_i32 = arith.constant 0 : i32
    %c0_i32_0 = arith.constant 0 : i32
    %c0_i32_1 = arith.constant 0 : i32
    return %c0_i32, %c0_i32_0 : i32, i32
  }
  func.func @transform_7(%arg0: i32) -> (i32, i32) {
    %c0_i32 = arith.constant 0 : i32
    %c0_i32_0 = arith.constant 0 : i32
    %c0_i32_1 = arith.constant 0 : i32
    return %c0_i32, %c0_i32_0 : i32, i32
  }
  func.func @transform_8(%arg0: i32) -> (i32, i32) {
    %c0_i32 = arith.constant 0 : i32
    %c0_i32_0 = arith.constant 0 : i32
    %c0_i32_1 = arith.constant 0 : i32
    return %c0_i32, %c0_i32_0 : i32, i32
  }
  func.func @transform_9(%arg0: i32) -> (i32, i32) {
    %c0_i32 = arith.constant 0 : i32
    %c0_i32_0 = arith.constant 0 : i32
    return %c0_i32, %arg0 : i32, i32
  }
}

</mosaic_0001>

<bundles_post_ra>
// kernel: mbconv_forward.1
= control target key start
LH: loop header
LB: loop body
LE: loop exit
PB: predicated region body
PF: predicated region fallthrough
CT: control target
= control target key end

     0   :  { %v1292_v2 = vmov 0   ;;  %vm71_vm0 = vcmask 1041408   ;;  %vm67_vm1 = vcmask 31744   ;;  %s1293_s15 = smov 17   ;;  %s1295_s16 = smov 15   ;;  %vm142_vm2 = vcmask 1040384   ;;  %s1704_s0 = inlined_call_operand.vmem [shape: f32[4,512], index: 0, kind: input, shape index: {}]   ;;  %s1705_s2 = inlined_call_operand.vmem [shape: f32[8,1], index: 2, kind: input, shape index: {}]   ;;  %s1706_s1 = inlined_call_operand.vmem [shape: bf16[8,4], index: 1, kind: input, shape index: {}]   ;;  %s1707_s6 = inlined_call_operand.vmem [shape: f32[9,512], index: 6, kind: input, shape index: {}]   ;;  %s1708_s4 = inlined_call_operand.vmem [shape: f32[8,9], index: 4, kind: input, shape index: {}]   ;;  %s1709_s5 = inlined_call_operand.vmem [shape: f32[8,1], index: 5, kind: input, shape index: {}]   ;;  %s1710_s3 = inlined_call_operand.vmem [shape: bf16[9,8,8], index: 3, kind: input, shape index: {}]   ;;  %s1711_s8 = inlined_call_operand.vmem [shape: f32[4,1], index: 8, kind: input, shape index: {}]   ;;  %s1712_s7 = inlined_call_operand.vmem [shape: bf16[4,8], index: 7, kind: input, shape index: {}]   ;;  %s1713_s9 = inlined_call_operand.vmem [shape: f32[4,512], index: 9, kind: output, shape index: {}]  }
   0x1   :  { %v33_v0 = vld [vmem:[%s1704_s0] sm:$0xff]  ;;  %v34_v1 = vld [vmem:[%s1704_s0 + $0x8] sm:$0xff]  ;;  %1286 = vset.pattern.permute.xlu0 %v1292_v2  ;;  %1287 = vset.pattern.permute.xlu1 %v1292_v2  ;;  %v41_v30 = vld [vmem:[%s1707_s6 + $0x30] sm:$0x1]  ;;  %vm138_vm3 = vcmask 72704   ;;  %s1296_s27 = smov 1   ;;  %v252_v42 = vlaneseq }
   0x2   :  { %46 = vst [vmem:[#allocation1] ss:$2 sm:$0xff] %v33_v0  ;;  %v61_v3 = vld [vmem:[%s1705_s2] sm:$0xff]  ;;  %v42_v31 = vld [vmem:[%s1707_s6 + $0x38] sm:$0x1]  ;;  %v1396_v32 = vld [vmem:[%s1707_s6 + $0x10] sm:$0xff] }
   0x3   :  { %48 = vst [vmem:[#allocation1 + $0x10] ss:$2 sm:$0xff] %v34_v1  ;;  %64 = vperm.xlu0 %1286, %v61_v3   ;;  %v43_v15 = vld [vmem:[%s1706_s1] sm:$0xf]  ;;  %s1294_s1 = smov 16   ;;  %v1402_v33 = vld [vmem:[%s1707_s6 + $0x18] sm:$0xff] }
   0x4   :  { %v137_v34 = vld [vmem:[%s1708_s4] sm:$0xff]  ;;  %v40_v36 = vld [vmem:[%s1707_s6 + $0x28] sm:$0x1]  ;;  %s1297_s14 = smov 127   ;;  %s1298_s0 = smov 113   ;;  %v1453_v43 = vand.u32 127, %v252_v42 }
   0x5   :  { %v39_v35 = vld [vmem:[%s1707_s6 + $0x20] sm:$0x1]  ;;  %v1428_v38 = vld [vmem:[%s1707_s6 + $0x8] sm:$0xff]  ;;  %s1299_s2 = smov 112   ;;  %v261_v54 = vperm.slane %v1396_v32, 0  ;;  %vm276_vm6 = vcmask 1043456  }
   0x6   :  { %v1421_v37 = vld [vmem:[%s1707_s6] sm:$0xff]  ;;  %vm353_vm4 = vcmp.lt.s32.totalorder %v1453_v43, 16  ;;  %v359_v45 = vperm.slane %v1428_v38, 1  ;;  %vm254_vm5 = vcmp.lt.s32.totalorder %v1453_v43, 17  ;;  %v260_v47 = vperm.slane %v1428_v38, 0 }
   0x7   :  { %v136_v39 = vld [vmem:[%s1709_s5] sm:$0xff]  ;;  %v360_v56 = vperm.slane %v1396_v32, 1  ;;  %vm272_vm7 = vcmask 64512   ;;  %vm451_vm8 = vcmp.lt.s32.totalorder %v1453_v43, 15  ;;  %vm549_vm9 = vcmp.lt.s32.totalorder %v1453_v43, 1 }
   0x8   :  { %v267_v59 = vld [vmem:[%s1710_s3] sm:$0xf]  ;;  %vm724_vm10 = vcmp.lt.s32.totalorder %v1453_v43, 127  ;;  %vm822_vm11 = vcmp.lt.s32.totalorder %v1453_v43, 113  ;;  %vm920_vm12 = vcmp.lt.s32.totalorder %v1453_v43, 112  ;;  %vm1018_vm13 = vcmp.lt.s32.totalorder %v1453_v43, 111 }
   0x9   :  { %v49_v4 = vld.sshfl [vmem:[#allocation1] sm:$0xff pattern:$0x75316420]  ;;  %v50_v5 = vld.sshfl [vmem:[#allocation1 + $0x8] sm:$0xff pattern:$0x75316420] }
   0xa   :  { %v57_v6 = vpack.c.bf16 %v49_v4, %v49_v4  ;;  %v58_v7 = vpack.c.bf16 %v50_v5, %v50_v5  ;;  %1186 = vst [vmem:[#allocation1] ss:$2 sm:$0xff] %v33_v0  ;;  %v51_v8 = vld.sshfl [vmem:[#allocation1 + $0x10] sm:$0xff pattern:$0x75316420]  ;;  %v259_v4 = vperm.slane %v1421_v37, 0 }
   0xb   :  { %v59_v9 = vpack.c.bf16 %v51_v8, %v51_v8  ;;  %v52_v10 = vld.sshfl [vmem:[#allocation1 + $0x18] sm:$0xff pattern:$0x75316420]  ;;  %v262_v5 = vperm.slane %v1402_v33, 0 }
   0xc   :  { %v73_v11 = vsel %vm71_vm0, %v57_v6, 0  ;;  %v76_v12 = vsel %vm71_vm0, %v58_v7, 0  ;;  %v60_v13 = vpack.c.bf16 %v52_v10, %v52_v10  ;;  %1188 = vst [vmem:[#allocation1 + $0x10] ss:$2 sm:$0xff] %v34_v1 }
   0xd   :  { %91 = vmatpush.bf16.msra.mxu0 %v73_v11  ;;  %104 = vmatpush.bf16.msra.mxu1 %v76_v12  ;;  %v79_v14 = vsel %vm71_vm0, %v59_v9, 0 }
   0xe   :  { %117 = vmatpush.bf16.msra.mxu2 %v79_v14  ;;  %v82_v16 = vsel %vm71_vm0, %v60_v13, 0 }
   0xf   :  { %130 = vmatpush.bf16.msra.mxu3 %v82_v16 }
  0x10   :  { %1217 = vmatmul.msk.bf16.vlgmr.msra.gmra.mxu0 %vm67_vm1, %v43_v15  ;;  %1218 = vmatmul.msk.bf16.vlgmr.msra.gmra.mxu1 %vm67_vm1, %v43_v15 }
  0x11   :  { %1219 = vmatmul.msk.bf16.vlgmr.msra.gmra.mxu2 %vm67_vm1, %v43_v15  ;;  %1221 = vmatpush.msk.msrb.mxu0 %vm142_vm2, %v39_v35 }
  0x12   :  { %1220 = vmatmul.msk.bf16.vlgmr.msra.gmra.mxu3 %vm67_vm1, %v43_v15  ;;  %1225 = vmatpush.msk.msrb.mxu2 %vm142_vm2, %v41_v30 }
  0x13   :  { %1227 = vmatpush.msk.msrb.mxu3 %vm142_vm2, %v42_v31  ;;  %1223 = vmatpush.msk.msrb.mxu1 %vm142_vm2, %v40_v36 }
  0x14   :  { %210 = vmatpush.msrb.mxu2 %v1396_v32  ;;  %170 = vmatpush.msrb.mxu0 %v1421_v37 }
  0x15   :  { %230 = vmatpush.msrb.mxu3 %v1402_v33  ;;  %190 = vmatpush.msrb.mxu1 %v1428_v38 }
  0x20   :  { %1222 = vmatmul.msk.f32.vlgmr.msrb.gmra.mxu0 %vm138_vm3, %v137_v34  ;;  %1224 = vmatmul.msk.f32.vlgmr.msrb.gmra.mxu1 %vm138_vm3, %v137_v34 }
  0x21   :  { %1226 = vmatmul.msk.f32.vlgmr.msrb.gmra.mxu2 %vm138_vm3, %v137_v34 }
  0x22   :  { %1228 = vmatmul.msk.f32.vlgmr.msrb.gmra.mxu3 %vm138_vm3, %v137_v34 }
  0x75   :  { %v65_v17 = vpop.permute.xlu0 %64 }
  0x8d   :  { %v93_v18 = vpop.f32.mrf.mxu0  ;;  %v106_v19 = vpop.f32.mrf.mxu1 }
  0x8e   :  { %v1367_v20 = vadd.f32 %v93_v18, %v65_v17  ;;  %v1369_v21 = vadd.f32 %v106_v19, %v65_v17  ;;  %v358_v18 = vperm.slane %v1421_v37, 1  ;;  %v361_v19 = vperm.slane %v1402_v33, 1 }
  0x90   :  { %246 = vrot.lane.b32.xlu0 %v1369_v21, %s1293_s15  ;;  %244 = vrot.lane.b32.xlu2 %v1367_v20, %s1293_s15 }
  0x94   :  { %v119_v22 = vpop.f32.mrf.mxu2 }
  0x95   :  { %v1373_v23 = vadd.f32 %v119_v22, %v65_v17  ;;  %v132_v24 = vpop.f32.mrf.mxu3  ;;  %v108_v25 = vpop.f32.mrf.mxu1  ;;  %v456_v22 = vperm.slane %v1421_v37, 2 }
  0x96   :  { %v95_v26 = vpop.f32.mrf.mxu0  ;;  %v1378_v28 = vadd.f32 %v132_v24, %v65_v17  ;;  %v457_v24 = vperm.slane %v1428_v38, 2 }
  0x97   :  { %248 = vrot.lane.b32.xlu1 %v1373_v23, %s1293_s15  ;;  %v1233_v26 = vld [vmem:[%s1710_s3 + $0x4] sm:$0xf] }
  0x98   :  { %349 = vrot.lane.b32.xlu0 %v1373_v23, %s1294_s1  ;;  %347 = vrot.lane.b32.xlu2 %v1369_v21, %s1294_s1 }
  0x9c   :  { %v121_v27 = vpop.f32.mrf.mxu2 }
  0x9d   :  { %v134_v29 = vpop.f32.mrf.mxu3 }
  0x9f   :  { %250 = vrot.lane.b32.xlu1 %v1378_v28, %s1293_s15  ;;  %s1300_s15 = smov 111  }
  0xa0   :  { %445 = vrot.lane.b32.xlu0 %v1369_v21, %s1295_s16  ;;  %345 = vrot.lane.b32.xlu2 %v1367_v20, %s1294_s1 }
  0xa7   :  { %351 = vrot.lane.b32.xlu1 %v1378_v28, %s1294_s1 }
  0xa8   :  { %443 = vrot.lane.b32.xlu0 %v1367_v20, %s1295_s16  ;;  %449 = vrot.lane.b32.xlu2 %v1378_v28, %s1295_s16 }
  0xaf   :  { %447 = vrot.lane.b32.xlu1 %v1373_v23, %s1295_s16 }
  0xb0   :  { %547 = vrot.lane.b32.xlu0 %v1378_v28, %s1296_s27  ;;  %545 = vrot.lane.b32.xlu2 %v1373_v23, %s1296_s27 }
  0xb7   :  { %543 = vrot.lane.b32.xlu1 %v1369_v21, %s1296_s27 }
  0xb8   :  { %720 = vrot.lane.b32.xlu0 %v1373_v23, %s1297_s14  ;;  %716 = vrot.lane.b32.xlu2 %v1367_v20, %s1297_s14 }
  0xbf   :  { %541 = vrot.lane.b32.xlu1 %v1367_v20, %s1296_s27 }
  0xc0   :  { %814 = vrot.lane.b32.xlu0 %v1367_v20, %s1298_s0  ;;  %718 = vrot.lane.b32.xlu2 %v1369_v21, %s1297_s14 }
  0xc7   :  { %722 = vrot.lane.b32.xlu1 %v1378_v28, %s1297_s14 }
  0xc8   :  { %816 = vrot.lane.b32.xlu0 %v1369_v21, %s1298_s0  ;;  %820 = vrot.lane.b32.xlu2 %v1378_v28, %s1298_s0 }
  0xcf   :  { %818 = vrot.lane.b32.xlu1 %v1373_v23, %s1298_s0 }
  0xd0   :  { %918 = vrot.lane.b32.xlu0 %v1378_v28, %s1299_s2  ;;  %916 = vrot.lane.b32.xlu2 %v1373_v23, %s1299_s2 }
  0xd7   :  { %912 = vrot.lane.b32.xlu1 %v1367_v20, %s1299_s2 }
  0xd8   :  { %1014 = vrot.lane.b32.xlu0 %v1373_v23, %s1300_s15  ;;  %1010 = vrot.lane.b32.xlu2 %v1367_v20, %s1300_s15 }
  0xdf   :  { %914 = vrot.lane.b32.xlu1 %v1369_v21, %s1299_s2 }
  0xe0   :  { %237 = vperm.xlu0 %1286, %v136_v39   ;;  %1012 = vrot.lane.b32.xlu2 %v1369_v21, %s1300_s15 }
  0xe7   :  { %1016 = vrot.lane.b32.xlu1 %v1378_v28, %s1300_s15 }
  0xea   :  { %v245_v40 = vpop.permute.xlu2 %244 }
  0xf2   :  { %v348_v41 = vpop.permute.xlu2 %347 }
  0xfa   :  { %v346_v44 = vpop.permute.xlu2 %345 }
  0xfb   :  { %v356_v46 = vsel %vm353_vm4, %v346_v44, %v348_v41 }
  0xfc   :  { %v363_v48 = vmul.f32 %v359_v45, %v356_v46 }
  0xfe   :  { %v369_v52 = vpack.c.bf16 %v363_v48, %v363_v48 }
 0x100   :  { %v379_v58 = vsel %vm276_vm6, %v369_v52, 0 }
 0x102   :  { %v247_v49 = vpop.permute.xlu0 %246  ;;  %v450_v11 = vpop.permute.xlu2 %449 }
 0x103   :  { %v257_v50 = vsel %vm254_vm5, %v245_v40, %v247_v49 }
 0x104   :  { %v264_v51 = vmul.f32 %v260_v47, %v257_v50  ;;  %v459_v50 = vperm.slane %v1402_v33, 2 }
 0x106   :  { %v269_v53 = vpack.c.bf16 %v264_v51, %v264_v51 }
 0x108   :  { %v281_v55 = vsel %vm276_vm6, %v269_v53, 0  ;;  %v557_v53 = vperm.slane %v1402_v33, 3 }
 0x109   :  { %v249_v57 = vpop.permute.xlu1 %248  ;;  %309 = vmatpush.bf16.msra.mxu1 %v281_v55 }
 0x10a   :  { %v256_v60 = vsel %vm254_vm5, %v247_v49, %v249_v57  ;;  %v350_v61 = vpop.permute.xlu0 %349  ;;  %v458_v49 = vperm.slane %v1396_v32, 2 }
 0x10b   :  { %v265_v62 = vmul.f32 %v261_v54, %v256_v60  ;;  %v355_v63 = vsel %vm353_vm4, %v348_v41, %v350_v61  ;;  %v546_v41 = vpop.permute.xlu2 %545 }
 0x10c   :  { %v364_v0 = vmul.f32 %v360_v56, %v355_v63  ;;  %1230 = vmatmul.msk.bf16.vlgmr.msra.gmra.mxu1 %vm272_vm7, %v267_v59 }
 0x10d   :  { %407 = vmatpush.bf16.msrb.mxu1 %v379_v58  ;;  %v270_v1 = vpack.c.bf16 %v265_v62, %v265_v62 }
 0x10e   :  { %v370_v2 = vpack.c.bf16 %v364_v0, %v364_v0 }
 0x10f   :  { %v284_v3 = vsel %vm276_vm6, %v270_v1, 0 }
 0x110   :  { %322 = vmatpush.bf16.msra.mxu2 %v284_v3  ;;  %v382_v6 = vsel %vm276_vm6, %v370_v2, 0 }
 0x111   :  { %v251_v7 = vpop.permute.xlu1 %250 }
 0x112   :  { %v255_v8 = vsel %vm254_vm5, %v249_v57, %v251_v7  ;;  %v258_v9 = vsel %vm254_vm5, %v251_v7, %v245_v40  ;;  %v446_v10 = vpop.permute.xlu0 %445 }
 0x113   :  { %v263_v12 = vmul.f32 %v259_v4, %v258_v9  ;;  %v266_v13 = vmul.f32 %v262_v5, %v255_v8  ;;  %1231 = vmatmul.msk.bf16.vlgmr.msra.gmra.mxu2 %vm272_vm7, %v267_v59  ;;  %v1520_v1 = vpop.permute.xlu2 %716  ;;  %v556_v4 = vperm.slane %v1396_v32, 3  ;;  %v1238_v8 = vld [vmem:[%s1710_s3 + $0x8] sm:$0xf] }
 0x114   :  { %420 = vmatpush.bf16.msrb.mxu2 %v382_v6 }
 0x115   :  { %v268_v14 = vpack.c.bf16 %v263_v12, %v263_v12  ;;  %v271_v15 = vpack.c.bf16 %v266_v13, %v266_v13  ;;  %v554_v13 = vperm.slane %v1421_v37, 3 }
 0x117   :  { %v278_v16 = vsel %vm276_vm6, %v268_v14, 0  ;;  %v287_v17 = vsel %vm276_vm6, %v271_v15, 0  ;;  %v555_v14 = vperm.slane %v1428_v38, 3  ;;  %v643_v15 = vpack.c.bf16 %v1373_v23, %v1373_v23 }
 0x118   :  { %296 = vmatpush.bf16.msra.mxu0 %v278_v16  ;;  %335 = vmatpush.bf16.msra.mxu3 %v287_v17  ;;  %v730_v17 = vperm.slane %v1428_v38, 5 }
 0x119   :  { %v352_v25 = vpop.permute.xlu1 %351  ;;  %v655_v23 = vsel %vm276_vm6, %v643_v15, 0 }
 0x11a   :  { %v354_v27 = vsel %vm353_vm4, %v350_v61, %v352_v25  ;;  %v357_v29 = vsel %vm353_vm4, %v352_v25, %v346_v44  ;;  %v444_v30 = vpop.permute.xlu0 %443 }
 0x11b   :  { %v362_v31 = vmul.f32 %v358_v18, %v357_v29  ;;  %v365_v34 = vmul.f32 %v361_v19, %v354_v27  ;;  %1232 = vmatmul.msk.bf16.vlgmr.msra.gmra.mxu3 %vm272_vm7, %v267_v59  ;;  %v454_v35 = vsel %vm451_vm8, %v444_v30, %v446_v10  ;;  %v455_v36 = vsel %vm451_vm8, %v450_v11, %v444_v30  ;;  %v719_v16 = vpop.permute.xlu2 %718 }
 0x11c   :  { %v460_v39 = vmul.f32 %v456_v22, %v455_v36  ;;  %v461_v40 = vmul.f32 %v457_v24, %v454_v35  ;;  %1229 = vmatmul.msk.bf16.vlgmr.msra.gmra.mxu0 %vm272_vm7, %v267_v59  ;;  %1235 = vmatmul.msk.bf16.vlgmr.msrb.gmra.mxu1 %vm272_vm7, %v1233_v26  ;;  %v642_v27 = vpack.c.bf16 %v1369_v21, %v1369_v21 }
 0x11d   :  { %v368_v42 = vpack.c.bf16 %v362_v31, %v362_v31  ;;  %v371_v44 = vpack.c.bf16 %v365_v34, %v365_v34  ;;  %v641_v21 = vpack.c.bf16 %v1367_v20, %v1367_v20 }
 0x11e   :  { %v466_v45 = vpack.c.bf16 %v460_v39, %v460_v39  ;;  %v467_v46 = vpack.c.bf16 %v461_v40, %v461_v40  ;;  %v731_v39 = vperm.slane %v1396_v32, 5  ;;  %v644_v40 = vpack.c.bf16 %v1378_v28, %v1378_v28 }
 0x11f   :  { %v376_v47 = vsel %vm276_vm6, %v368_v42, 0  ;;  %v385_v48 = vsel %vm276_vm6, %v371_v44, 0  ;;  %v649_v20 = vsel %vm276_vm6, %v641_v21, 0 }
 0x120   :  { %394 = vmatpush.bf16.msrb.mxu0 %v376_v47  ;;  %433 = vmatpush.bf16.msrb.mxu3 %v385_v48  ;;  %v474_v51 = vsel %vm276_vm6, %v466_v45, 0  ;;  %v477_v52 = vsel %vm276_vm6, %v467_v46, 0  ;;  %v1243_v46 = vld [vmem:[%s1710_s3 + $0xc] sm:$0xf]  ;;  %v658_v28 = vsel %vm276_vm6, %v644_v40, 0 }
 0x121   :  { %v448_v54 = vpop.permute.xlu1 %447  ;;  %505 = vmatpush.bf16.msra.mxu1 %v477_v52 }
 0x122   :  { %v452_v55 = vsel %vm451_vm8, %v448_v54, %v450_v11  ;;  %v453_v56 = vsel %vm451_vm8, %v446_v10, %v448_v54  ;;  %v548_v57 = vpop.permute.xlu0 %547 }
 0x123   :  { %v462_v58 = vmul.f32 %v458_v49, %v453_v56  ;;  %v463_v59 = vmul.f32 %v459_v50, %v452_v55  ;;  %v550_v60 = vsel %vm549_vm9, %v546_v41, %v548_v57  ;;  %1236 = vmatmul.msk.bf16.vlgmr.msrb.gmra.mxu2 %vm272_vm7, %v1233_v26  ;;  %v732_v49 = vperm.slane %v1402_v33, 5 }
 0x124   :  { %492 = vmatpush.bf16.msra.mxu0 %v474_v51  ;;  %v561_v61 = vmul.f32 %v557_v53, %v550_v60  ;;  %v729_v51 = vperm.slane %v1421_v37, 5  ;;  %v727_v53 = vsel %vm724_vm10, %v1520_v1, %v719_v16  ;;  %v828_v55 = vperm.slane %v1428_v38, 6 }
 0x125   :  { %v468_v62 = vpack.c.bf16 %v462_v58, %v462_v58  ;;  %v469_v63 = vpack.c.bf16 %v463_v59, %v463_v59  ;;  %v821_v58 = vpop.permute.xlu2 %820 }
 0x126   :  { %v567_v0 = vpack.c.bf16 %v561_v61, %v561_v61  ;;  %v733_v61 = vmul.f32 %v729_v51, %v727_v53 }
 0x127   :  { %v480_v2 = vsel %vm276_vm6, %v468_v62, 0  ;;  %v483_v3 = vsel %vm276_vm6, %v469_v63, 0 }
 0x128   :  { %518 = vmatpush.bf16.msra.mxu2 %v480_v2  ;;  %531 = vmatpush.bf16.msra.mxu3 %v483_v3  ;;  %v581_v6 = vsel %vm276_vm6, %v567_v0, 0  ;;  %v829_v0 = vperm.slane %v1396_v32, 6 }
 0x129   :  { %v544_v5 = vpop.permute.xlu1 %543 }
 0x12a   :  { %v551_v7 = vsel %vm549_vm9, %v544_v5, %v546_v41  ;;  %v721_v11 = vpop.permute.xlu0 %720  ;;  %v652_v41 = vsel %vm276_vm6, %v642_v27, 0 }
 0x12b   :  { %v560_v9 = vmul.f32 %v556_v4, %v551_v7  ;;  %1237 = vmatmul.msk.bf16.vlgmr.msrb.gmra.mxu3 %vm272_vm7, %v1233_v26  ;;  %v726_v19 = vsel %vm724_vm10, %v719_v16, %v721_v11  ;;  %v926_v16 = vperm.slane %v1428_v38, 7 }
 0x12c   :  { %1234 = vmatmul.msk.bf16.vlgmr.msrb.gmra.mxu0 %vm272_vm7, %v1233_v26  ;;  %629 = vmatpush.bf16.msrb.mxu3 %v581_v6  ;;  %v734_v29 = vmul.f32 %v730_v17, %v726_v19 }
 0x12d   :  { %v566_v10 = vpack.c.bf16 %v560_v9, %v560_v9  ;;  %1240 = vmatmul.msk.bf16.vlgmr.msra.gmra.mxu1 %vm272_vm7, %v1238_v8  ;;  %v917_v9 = vpop.permute.xlu2 %916 }
 0x12e   :  { %v740_v42 = vpack.c.bf16 %v734_v29, %v734_v29  ;;  %v927_v29 = vperm.slane %v1396_v32, 7 }
 0x12f   :  { %v578_v12 = vsel %vm276_vm6, %v566_v10, 0 }
 0x130   :  { %616 = vmatpush.bf16.msrb.mxu2 %v578_v12  ;;  %v750_v48 = vsel %vm276_vm6, %v740_v42, 0 }
 0x131   :  { %v542_v18 = vpop.permute.xlu1 %541 }
 0x132   :  { %v552_v22 = vsel %vm549_vm9, %v542_v18, %v544_v5  ;;  %v553_v24 = vsel %vm549_vm9, %v548_v57, %v542_v18  ;;  %v1551_v34 = vpop.permute.xlu0 %814  ;;  %v1248_v5 = vld [vmem:[%s1710_s3 + $0x10] sm:$0xf] }
 0x133   :  { %v558_v25 = vmul.f32 %v554_v13, %v553_v24  ;;  %v559_v26 = vmul.f32 %v555_v14, %v552_v22  ;;  %1241 = vmatmul.msk.bf16.vlgmr.msra.gmra.mxu2 %vm272_vm7, %v1238_v8  ;;  %v826_v13 = vsel %vm822_vm11, %v821_v58, %v1551_v34  ;;  %v827_v14 = vperm.slane %v1421_v37, 6 }
 0x134   :  { %693 = vmatpush.bf16.msra.mxu2 %v655_v23 }
 0x135   :  { %v564_v30 = vpack.c.bf16 %v558_v25, %v558_v25  ;;  %v565_v31 = vpack.c.bf16 %v559_v26, %v559_v26  ;;  %v1011_v27 = vpop.permute.xlu2 %1010 }
 0x137   :  { %v572_v35 = vsel %vm276_vm6, %v564_v30, 0  ;;  %v575_v36 = vsel %vm276_vm6, %v565_v31, 0 }
 0x138   :  { %590 = vmatpush.bf16.msrb.mxu0 %v572_v35  ;;  %603 = vmatpush.bf16.msrb.mxu1 %v575_v36 }
 0x139   :  { %v723_v44 = vpop.permute.xlu1 %722 }
 0x13a   :  { %v725_v45 = vsel %vm724_vm10, %v721_v11, %v723_v44  ;;  %v728_v52 = vsel %vm724_vm10, %v723_v44, %v1520_v1  ;;  %v817_v54 = vpop.permute.xlu0 %816  ;;  %v739_v1 = vpack.c.bf16 %v733_v61, %v733_v61  ;;  %v830_v11 = vperm.slane %v1402_v33, 6 }
 0x13b   :  { %v735_v47 = vmul.f32 %v731_v39, %v725_v45  ;;  %1242 = vmatmul.msk.bf16.vlgmr.msra.gmra.mxu3 %vm272_vm7, %v1238_v8  ;;  %v736_v59 = vmul.f32 %v732_v49, %v728_v52  ;;  %v825_v15 = vsel %vm822_vm11, %v1551_v34, %v817_v54  ;;  %v1253_v34 = vld [vmem:[%s1710_s3 + $0x14] sm:$0xf]  ;;  %v925_v44 = vperm.slane %v1421_v37, 7  ;;  %v1291_v45 = vld [vmem:[%s1707_s6 + $0x28] ss:$0 sm:$0xff] }
 0x13c   :  { %680 = vmatpush.bf16.msra.mxu1 %v652_v41  ;;  %1239 = vmatmul.msk.bf16.vlgmr.msra.gmra.mxu0 %vm272_vm7, %v1238_v8  ;;  %v747_v8 = vsel %vm276_vm6, %v739_v1, 0  ;;  %v834_v19 = vmul.f32 %v830_v11, %v826_v13  ;;  %v831_v24 = vmul.f32 %v827_v14, %v825_v15  ;;  %v928_v41 = vperm.slane %v1402_v33, 7  ;;  %v1268_v13 = vld [vmem:[%s1710_s3 + $0x20] sm:$0xf]  ;;  %v212_v14 = vpop.f32.mrf.mxu2  ;;  %v172_v15 = vpop.f32.mrf.mxu0 }
 0x13d   :  { %706 = vmatpush.bf16.msra.mxu3 %v658_v28  ;;  %667 = vmatpush.bf16.msra.mxu0 %v649_v20  ;;  %v741_v50 = vpack.c.bf16 %v735_v47, %v735_v47  ;;  %v742_v63 = vpack.c.bf16 %v736_v59, %v736_v59 }
 0x13e   :  { %1245 = vmatmul.msk.bf16.vlgmr.msrb.gmra.mxu1 %vm272_vm7, %v1243_v46  ;;  %v840_v23 = vpack.c.bf16 %v834_v19, %v834_v19  ;;  %v837_v30 = vpack.c.bf16 %v831_v24, %v831_v24 }
 0x13f   :  { %v753_v60 = vsel %vm276_vm6, %v741_v50, 0  ;;  %v756_v7 = vsel %vm276_vm6, %v742_v63, 0  ;;  %v1288_v50 = vld [vmem:[%s1707_s6 + $0x30] ss:$0 sm:$0xff] }
 0x140   :  { %778 = vmatpush.bf16.msrb.mxu1 %v750_v48  ;;  %v854_v36 = vsel %vm276_vm6, %v840_v23, 0  ;;  %v845_v39 = vsel %vm276_vm6, %v837_v30, 0 }
 0x141   :  { %v819_v56 = vpop.permute.xlu1 %818 }
 0x142   :  { %v824_v57 = vsel %vm822_vm11, %v817_v54, %v819_v56  ;;  %v823_v2 = vsel %vm822_vm11, %v819_v56, %v821_v58  ;;  %v919_v25 = vpop.permute.xlu0 %918 }
 0x143   :  { %1246 = vmatmul.msk.bf16.vlgmr.msrb.gmra.mxu2 %vm272_vm7, %v1243_v46  ;;  %v832_v62 = vmul.f32 %v828_v55, %v824_v57  ;;  %v833_v6 = vmul.f32 %v829_v0, %v823_v2  ;;  %v921_v38 = vsel %vm920_vm12, %v917_v9, %v919_v25  ;;  %v1258_v55 = vld [vmem:[%s1710_s3 + $0x18] sm:$0xf] }
 0x144   :  { %791 = vmatpush.bf16.msrb.mxu2 %v753_v60  ;;  %v931_v35 = vmul.f32 %v927_v29, %v921_v38  ;;  %v1289_v60 = vld [vmem:[%s1707_s6 + $0x38] ss:$0 sm:$0xff] }
 0x145   :  { %v838_v3 = vpack.c.bf16 %v832_v62, %v832_v62  ;;  %v839_v12 = vpack.c.bf16 %v833_v6, %v833_v6  ;;  %v1290_v62 = vld [vmem:[%s1707_s6 + $0x20] ss:$0 sm:$0xff]  ;;  %v1263_v6 = vld [vmem:[%s1710_s3 + $0x1c] sm:$0xf] }
 0x146   :  { %v937_v40 = vpack.c.bf16 %v931_v35, %v931_v35 }
 0x147   :  { %v848_v10 = vsel %vm276_vm6, %v838_v3, 0  ;;  %v851_v22 = vsel %vm276_vm6, %v839_v12, 0 }
 0x148   :  { %v949_v20 = vsel %vm276_vm6, %v937_v40, 0 }
 0x149   :  { %v913_v4 = vpop.permute.xlu1 %912 }
 0x14a   :  { %v1015_v21 = vpop.permute.xlu0 %1014  ;;  %v924_v42 = vsel %vm920_vm12, %v919_v25, %v913_v4 }
 0x14b   :  { %1247 = vmatmul.msk.bf16.vlgmr.msrb.gmra.mxu3 %vm272_vm7, %v1243_v46  ;;  %v932_v33 = vmul.f32 %v928_v41, %v924_v42 }
 0x14c   :  { %1244 = vmatmul.msk.bf16.vlgmr.msrb.gmra.mxu0 %vm272_vm7, %v1243_v46  ;;  %804 = vmatpush.bf16.msrb.mxu3 %v756_v7  ;;  %v1013_v46 = vpop.permute.xlu2 %1012 }
 0x14d   :  { %765 = vmatpush.bf16.msrb.mxu0 %v747_v8  ;;  %v1020_v28 = vsel %vm1018_vm13, %v1013_v46, %v1015_v21  ;;  %v938_v51 = vpack.c.bf16 %v932_v33, %v932_v33  ;;  %v1021_v0 = vsel %vm1018_vm13, %v1011_v27, %v1013_v46  ;;  %v192_v8 = vpop.f32.mrf.mxu1 }
 0x14e   :  { %1250 = vmatmul.msk.bf16.vlgmr.msra.gmra.mxu1 %vm272_vm7, %v1248_v5  ;;  %v1028_v37 = vmul.f32 %v1291_v45, %v1020_v28  ;;  %v1027_v3 = vmul.f32 %v1290_v62, %v1021_v0 }
 0x14f   :  { %876 = vmatpush.bf16.msra.mxu1 %v848_v10  ;;  %v952_v57 = vsel %vm276_vm6, %v938_v51, 0 }
 0x150   :  { %v1034_v54 = vpack.c.bf16 %v1028_v37, %v1028_v37 }
 0x151   :  { %v915_v17 = vpop.permute.xlu1 %914 }
 0x152   :  { %v922_v18 = vsel %vm920_vm12, %v915_v17, %v917_v9  ;;  %v923_v47 = vsel %vm920_vm12, %v913_v4, %v915_v17  ;;  %v1044_v59 = vsel %vm276_vm6, %v1034_v54, 0  ;;  %v238_v9 = vpop.permute.xlu0 %237  ;;  %v232_v17 = vpop.f32.mrf.mxu3 }
 0x153   :  { %1251 = vmatmul.msk.bf16.vlgmr.msra.gmra.mxu2 %vm272_vm7, %v1248_v5  ;;  %v930_v26 = vmul.f32 %v926_v16, %v922_v18  ;;  %v929_v48 = vmul.f32 %v925_v44, %v923_v47  ;;  %v241_v10 = vsub.f32 %v238_v9, %v192_v8  ;;  %v242_v29 = vsub.f32 %v238_v9, %v212_v14 }
 0x154   :  { %889 = vmatpush.bf16.msra.mxu2 %v851_v22  ;;  %v240_v38 = vsub.f32 %v238_v9, %v172_v15  ;;  %v243_v41 = vsub.f32 %v238_v9, %v232_v17 }
 0x155   :  { %v936_v31 = vpack.c.bf16 %v930_v26, %v930_v26  ;;  %v935_v52 = vpack.c.bf16 %v929_v48, %v929_v48 }
 0x157   :  { %v946_v32 = vsel %vm276_vm6, %v936_v31, 0  ;;  %v943_v58 = vsel %vm276_vm6, %v935_v52, 0 }
 0x159   :  { %v1017_v49 = vpop.permute.xlu1 %1016 }
 0x15a   :  { %v1019_v53 = vsel %vm1018_vm13, %v1015_v21, %v1017_v49  ;;  %v1022_v63 = vsel %vm1018_vm13, %v1017_v49, %v1011_v27 }
 0x15b   :  { %1252 = vmatmul.msk.bf16.vlgmr.msra.gmra.mxu3 %vm272_vm7, %v1248_v5  ;;  %v1029_v56 = vmul.f32 %v1288_v50, %v1019_v53  ;;  %v1030_v1 = vmul.f32 %v1289_v60, %v1022_v63 }
 0x15c   :  { %1249 = vmatmul.msk.bf16.vlgmr.msra.gmra.mxu0 %vm272_vm7, %v1248_v5  ;;  %902 = vmatpush.bf16.msra.mxu3 %v854_v36  ;;  %v1033_v5 = vpack.c.bf16 %v1027_v3, %v1027_v3 }
 0x15d   :  { %863 = vmatpush.bf16.msra.mxu0 %v845_v39  ;;  %v1035_v61 = vpack.c.bf16 %v1029_v56, %v1029_v56  ;;  %v1036_v4 = vpack.c.bf16 %v1030_v1, %v1030_v1 }
 0x15e   :  { %1255 = vmatmul.msk.bf16.vlgmr.msrb.gmra.mxu1 %vm272_vm7, %v1253_v34  ;;  %v1041_v43 = vsel %vm276_vm6, %v1033_v5, 0 }
 0x15f   :  { %974 = vmatpush.bf16.msrb.mxu1 %v946_v32  ;;  %v1047_v2 = vsel %vm276_vm6, %v1035_v61, 0  ;;  %v1050_v7 = vsel %vm276_vm6, %v1036_v4, 0 }
 0x163   :  { %1256 = vmatmul.msk.bf16.vlgmr.msrb.gmra.mxu2 %vm272_vm7, %v1253_v34 }
 0x164   :  { %987 = vmatpush.bf16.msrb.mxu2 %v949_v20 }
 0x16b   :  { %1257 = vmatmul.msk.bf16.vlgmr.msrb.gmra.mxu3 %vm272_vm7, %v1253_v34 }
 0x16c   :  { %1254 = vmatmul.msk.bf16.vlgmr.msrb.gmra.mxu0 %vm272_vm7, %v1253_v34  ;;  %1000 = vmatpush.bf16.msrb.mxu3 %v952_v57 }
 0x16d   :  { %961 = vmatpush.bf16.msrb.mxu0 %v943_v58 }
 0x16e   :  { %1260 = vmatmul.msk.bf16.vlgmr.msra.gmra.mxu1 %vm272_vm7, %v1258_v55 }
 0x16f   :  { %1072 = vmatpush.bf16.msra.mxu1 %v1044_v59 }
 0x173   :  { %1261 = vmatmul.msk.bf16.vlgmr.msra.gmra.mxu2 %vm272_vm7, %v1258_v55 }
 0x174   :  { %1085 = vmatpush.bf16.msra.mxu2 %v1047_v2 }
 0x17b   :  { %1262 = vmatmul.msk.bf16.vlgmr.msra.gmra.mxu3 %vm272_vm7, %v1258_v55 }
 0x17c   :  { %1259 = vmatmul.msk.bf16.vlgmr.msra.gmra.mxu0 %vm272_vm7, %v1258_v55  ;;  %1098 = vmatpush.bf16.msra.mxu3 %v1050_v7 }
 0x17d   :  { %1059 = vmatpush.bf16.msra.mxu0 %v1041_v43 }
 0x17e   :  { %1265 = vmatmul.msk.bf16.vlgmr.msrb.gmra.mxu1 %vm272_vm7, %v1263_v6 }
 0x183   :  { %1266 = vmatmul.msk.bf16.vlgmr.msrb.gmra.mxu2 %vm272_vm7, %v1263_v6 }
 0x189   :  { %v311_v11 = vpop.f32.mrf.mxu1 }
 0x18a   :  { %v342_v12 = vadd.f32 %v311_v11, %v241_v10 }
 0x18b   :  { %1267 = vmatmul.msk.bf16.vlgmr.msrb.gmra.mxu3 %vm272_vm7, %v1263_v6 }
 0x18c   :  { %1264 = vmatmul.msk.bf16.vlgmr.msrb.gmra.mxu0 %vm272_vm7, %v1263_v6 }
 0x18e   :  { %1270 = vmatmul.msk.bf16.vlgmr.msra.gmra.mxu1 %vm272_vm7, %v1268_v13 }
 0x191   :  { %v313_v16 = vpop.f32.mrf.mxu1 }
 0x193   :  { %1271 = vmatmul.msk.bf16.vlgmr.msra.gmra.mxu2 %vm272_vm7, %v1268_v13 }
 0x196   :  { %v324_v18 = vpop.f32.mrf.mxu2 }
 0x197   :  { %v343_v30 = vadd.f32 %v324_v18, %v242_v29 }
 0x199   :  { %v298_v19 = vpop.f32.mrf.mxu0  ;;  %v409_v22 = vpop.f32.mrf.mxu1 }
 0x19a   :  { %v440_v24 = vadd.f32 %v409_v22, %v342_v12  ;;  %v341_v36 = vadd.f32 %v298_v19, %v240_v38 }
 0x19b   :  { %1272 = vmatmul.msk.bf16.vlgmr.msra.gmra.mxu3 %vm272_vm7, %v1268_v13 }
 0x19c   :  { %1269 = vmatmul.msk.bf16.vlgmr.msra.gmra.mxu0 %vm272_vm7, %v1268_v13 }
 0x19e   :  { %v326_v25 = vpop.f32.mrf.mxu2  ;;  %v337_v26 = vpop.f32.mrf.mxu3 }
 0x19f   :  { %v344_v42 = vadd.f32 %v337_v26, %v243_v41 }
 0x1a1   :  { %v300_v23 = vpop.f32.mrf.mxu0  ;;  %v411_v27 = vpop.f32.mrf.mxu1 }
 0x1a6   :  { %v339_v31 = vpop.f32.mrf.mxu3  ;;  %v422_v34 = vpop.f32.mrf.mxu2 }
 0x1a7   :  { %v441_v35 = vadd.f32 %v422_v34, %v343_v30 }
 0x1a9   :  { %v396_v39 = vpop.f32.mrf.mxu0 }
 0x1aa   :  { %v439_v32 = vadd.f32 %v396_v39, %v341_v36  ;;  %v507_v40 = vpop.f32.mrf.mxu1  ;;  %v1113_v36 = vld [vmem:[%s1711_s8] sm:$0xf] }
 0x1ab   :  { %v538_v21 = vadd.f32 %v507_v40, %v440_v24  ;;  %1116 = vperm.xlu1 %1287, %v1113_v36  }
 0x1ae   :  { %v424_v44 = vpop.f32.mrf.mxu2  ;;  %v435_v45 = vpop.f32.mrf.mxu3 }
 0x1af   :  { %v442_v46 = vadd.f32 %v435_v45, %v344_v42 }
 0x1b1   :  { %v398_v47 = vpop.f32.mrf.mxu0 }
 0x1b2   :  { %v509_v28 = vpop.f32.mrf.mxu1 }
 0x1b6   :  { %v437_v33 = vpop.f32.mrf.mxu3  ;;  %v520_v20 = vpop.f32.mrf.mxu2 }
 0x1b7   :  { %v539_v48 = vadd.f32 %v520_v20, %v441_v35 }
 0x1b9   :  { %v494_v37 = vpop.f32.mrf.mxu0 }
 0x1ba   :  { %v537_v49 = vadd.f32 %v494_v37, %v439_v32 }
 0x1bb   :  { %v605_v50 = vpop.f32.mrf.mxu1 }
 0x1bc   :  { %v636_v51 = vadd.f32 %v605_v50, %v538_v21 }
 0x1be   :  { %v522_v52 = vpop.f32.mrf.mxu2  ;;  %v533_v53 = vpop.f32.mrf.mxu3 }
 0x1bf   :  { %v540_v54 = vadd.f32 %v533_v53, %v442_v46 }
 0x1c1   :  { %v496_v55 = vpop.f32.mrf.mxu0 }
 0x1c3   :  { %v607_v56 = vpop.f32.mrf.mxu1 }
 0x1c6   :  { %v535_v57 = vpop.f32.mrf.mxu3  ;;  %v618_v58 = vpop.f32.mrf.mxu2 }
 0x1c7   :  { %v637_v59 = vadd.f32 %v618_v58, %v539_v48  ;;  %v1108_v48 = vld [vmem:[%s1712_s7] sm:$0x3] }
 0x1c9   :  { %v592_v60 = vpop.f32.mrf.mxu0 }
 0x1ca   :  { %v635_v61 = vadd.f32 %v592_v60, %v537_v49 }
 0x1cb   :  { %v682_v62 = vpop.f32.mrf.mxu1 }
 0x1cc   :  { %v713_v30 = vadd.f32 %v682_v62, %v636_v51 }
 0x1ce   :  { %v620_v63 = vpop.f32.mrf.mxu2  ;;  %v631_v0 = vpop.f32.mrf.mxu3 }
 0x1cf   :  { %v638_v1 = vadd.f32 %v631_v0, %v540_v54 }
 0x1d1   :  { %v594_v2 = vpop.f32.mrf.mxu0 }
 0x1d3   :  { %v684_v3 = vpop.f32.mrf.mxu1 }
 0x1d6   :  { %v633_v4 = vpop.f32.mrf.mxu3  ;;  %v695_v5 = vpop.f32.mrf.mxu2 }
 0x1d7   :  { %v714_v45 = vadd.f32 %v695_v5, %v637_v59 }
 0x1d9   :  { %v669_v6 = vpop.f32.mrf.mxu0 }
 0x1da   :  { %v712_v33 = vadd.f32 %v669_v6, %v635_v61 }
 0x1db   :  { %v780_v7 = vpop.f32.mrf.mxu1 }
 0x1dc   :  { %v811_v38 = vadd.f32 %v780_v7, %v713_v30  ;;  %v1191_v30 = vld.sshfl [vmem:[#allocation1 + $0x10] sm:$0xff pattern:$0x75316420] }
 0x1de   :  { %v697_v43 = vpop.f32.mrf.mxu2  ;;  %v708_v8 = vpop.f32.mrf.mxu3 }
 0x1df   :  { %v715_v54 = vadd.f32 %v708_v8, %v638_v1 }
 0x1e1   :  { %v671_v9 = vpop.f32.mrf.mxu0 }
 0x1e3   :  { %v782_v10 = vpop.f32.mrf.mxu1 }
 0x1e6   :  { %v710_v11 = vpop.f32.mrf.mxu3  ;;  %v793_v12 = vpop.f32.mrf.mxu2 }
 0x1e7   :  { %v812_v47 = vadd.f32 %v793_v12, %v714_v45  ;;  %v1190_v12 = vld.sshfl [vmem:[#allocation1 + $0x8] sm:$0xff pattern:$0x75316420] }
 0x1e9   :  { %v767_v13 = vpop.f32.mrf.mxu0 }
 0x1ea   :  { %v810_v49 = vadd.f32 %v767_v13, %v712_v33 }
 0x1eb   :  { %v878_v14 = vpop.f32.mrf.mxu1 }
 0x1ec   :  { %v909_v35 = vadd.f32 %v878_v14, %v811_v38 }
 0x1ee   :  { %v795_v15 = vpop.f32.mrf.mxu2  ;;  %v806_v16 = vpop.f32.mrf.mxu3 }
 0x1ef   :  { %v813_v57 = vadd.f32 %v806_v16, %v715_v54  ;;  %v1189_v15 = vld.sshfl [vmem:[#allocation1] sm:$0xff pattern:$0x75316420] }
 0x1f1   :  { %v769_v17 = vpop.f32.mrf.mxu0 }
 0x1f3   :  { %v880_v18 = vpop.f32.mrf.mxu1 }
 0x1f6   :  { %v808_v19 = vpop.f32.mrf.mxu3  ;;  %v891_v22 = vpop.f32.mrf.mxu2 }
 0x1f7   :  { %v910_v37 = vadd.f32 %v891_v22, %v812_v47 }
 0x1f9   :  { %v865_v24 = vpop.f32.mrf.mxu0 }
 0x1fa   :  { %v908_v51 = vadd.f32 %v865_v24, %v810_v49 }
 0x1fb   :  { %v976_v25 = vpop.f32.mrf.mxu1 }
 0x1fc   :  { %v1007_v39 = vadd.f32 %v976_v25, %v909_v35 }
 0x1fe   :  { %v893_v26 = vpop.f32.mrf.mxu2  ;;  %v904_v23 = vpop.f32.mrf.mxu3 }
 0x1ff   :  { %v911_v61 = vadd.f32 %v904_v23, %v813_v57  ;;  %v1192_v26 = vld.sshfl [vmem:[#allocation1 + $0x18] sm:$0xff pattern:$0x75316420] }
 0x201   :  { %v867_v27 = vpop.f32.mrf.mxu0 }
 0x203   :  { %v978_v29 = vpop.f32.mrf.mxu1 }
 0x206   :  { %v906_v31 = vpop.f32.mrf.mxu3  ;;  %v989_v34 = vpop.f32.mrf.mxu2 }
 0x207   :  { %v1008_v50 = vadd.f32 %v989_v34, %v910_v37 }
 0x209   :  { %v963_v32 = vpop.f32.mrf.mxu0 }
 0x20a   :  { %v1006_v56 = vadd.f32 %v963_v32, %v908_v51 }
 0x20b   :  { %v1074_v40 = vpop.f32.mrf.mxu1 }
 0x20c   :  { %v1105_v41 = vadd.f32 %v1074_v40, %v1007_v39 }
 0x20e   :  { %v1110_v21 = vpack.c.bf16 %v1105_v41, %v1105_v41  ;;  %v991_v42 = vpop.f32.mrf.mxu2  ;;  %v1002_v44 = vpop.f32.mrf.mxu3 }
 0x20f   :  { %v1009_v0 = vadd.f32 %v1002_v44, %v911_v61 }
 0x210   :  { %v1126_v46 = vsel %vm276_vm6, %v1110_v21, 0 }
 0x211   :  { %1154 = vmatpush.bf16.msrb.mxu1 %v1126_v46  ;;  %v965_v28 = vpop.f32.mrf.mxu0 }
 0x213   :  { %v1076_v20 = vpop.f32.mrf.mxu1 }
 0x214   :  { %1274 = vmatmul.msk.bf16.vlgmr.msrb.gmra.mxu1 %vm272_vm7, %v1108_v48 }
 0x216   :  { %v1004_v52 = vpop.f32.mrf.mxu3  ;;  %v1087_v53 = vpop.f32.mrf.mxu2 }
 0x217   :  { %v1106_v55 = vadd.f32 %v1087_v53, %v1008_v50 }
 0x219   :  { %v1111_v58 = vpack.c.bf16 %v1106_v55, %v1106_v55  ;;  %v1061_v59 = vpop.f32.mrf.mxu0 }
 0x21a   :  { %v1104_v60 = vadd.f32 %v1061_v59, %v1006_v56 }
 0x21b   :  { %v1129_v62 = vsel %vm276_vm6, %v1111_v58, 0 }
 0x21c   :  { %v1109_v63 = vpack.c.bf16 %v1104_v60, %v1104_v60  ;;  %1167 = vmatpush.bf16.msrb.mxu2 %v1129_v62 }
 0x21d   :  { %v1117_v9 = vpop.permute.xlu1 %1116 }
 0x21e   :  { %v1123_v2 = vsel %vm276_vm6, %v1109_v63, 0  ;;  %v1089_v3 = vpop.f32.mrf.mxu2  ;;  %v1100_v4 = vpop.f32.mrf.mxu3 }
 0x21f   :  { %v1107_v5 = vadd.f32 %v1100_v4, %v1009_v0  ;;  %1141 = vmatpush.bf16.msrb.mxu0 %v1123_v2  ;;  %1275 = vmatmul.msk.bf16.vlgmr.msrb.gmra.mxu2 %vm272_vm7, %v1108_v48 }
 0x221   :  { %v1112_v1 = vpack.c.bf16 %v1107_v5, %v1107_v5  ;;  %v1063_v6 = vpop.f32.mrf.mxu0 }
 0x222   :  { %1273 = vmatmul.msk.bf16.vlgmr.msrb.gmra.mxu0 %vm272_vm7, %v1108_v48 }
 0x223   :  { %v1132_v7 = vsel %vm276_vm6, %v1112_v1, 0 }
 0x224   :  { %1180 = vmatpush.bf16.msrb.mxu3 %v1132_v7 }
 0x226   :  { %v1102_v43 = vpop.f32.mrf.mxu3 }
 0x227   :  { %1276 = vmatmul.msk.bf16.vlgmr.msrb.gmra.mxu3 %vm272_vm7, %v1108_v48 }
 0x291   :  { %v1156_v8 = vpop.f32.mrf.mxu1 }
 0x292   :  { %v1157_v10 = vadd.f32 %v1156_v8, %v1117_v9 }
 0x294   :  { %v1198_v13 = vadd.f32 %v1190_v12, %v1157_v10 }
 0x296   :  { %v1205_v17 = vrot.slane %v1198_v13, 4 }
 0x299   :  { %v1158_v11 = vpop.f32.mrf.mxu1 }
 0x29f   :  { %v1143_v14 = vpop.f32.mrf.mxu0 }
 0x2a0   :  { %v1144_v16 = vadd.f32 %v1143_v14, %v1117_v9 }
 0x2a2   :  { %v1169_v18 = vpop.f32.mrf.mxu2  ;;  %v1197_v19 = vadd.f32 %v1189_v15, %v1144_v16 }
 0x2a3   :  { %v1170_v27 = vadd.f32 %v1169_v18, %v1117_v9 }
 0x2a4   :  { %v1207_v22 = vsel %vm276_vm6, %v1197_v19, %v1205_v17 }
 0x2a5   :  { %1211 = vst [vmem:[%s1713_s9] sm:$0xff] %v1207_v22  ;;  %v1199_v31 = vadd.f32 %v1191_v30, %v1170_v27 }
 0x2a7   :  { %v1145_v24 = vpop.f32.mrf.mxu0 }
 0x2aa   :  { %v1182_v25 = vpop.f32.mrf.mxu3  ;;  %v1171_v23 = vpop.f32.mrf.mxu2 }
 0x2ab   :  { %v1183_v29 = vadd.f32 %v1182_v25, %v1117_v9 }
 0x2ad   :  { %v1200_v38 = vadd.f32 %v1192_v26, %v1183_v29 }
 0x2af   :  { %v1206_v34 = vrot.slane %v1200_v38, 4 }
 0x2b1   :  { %v1208_v35 = vsel %vm276_vm6, %v1199_v31, %v1206_v34 }
 0x2b2   :  { %1212 = vst [vmem:[%s1713_s9 + $0x8] sm:$0xff] %v1208_v35  ;;  %v1184_v36 = vpop.f32.mrf.mxu3 }

</bundles_post_ra>
